<compile_context>
chip_gen: v7x
topology: tpu7x:2x2x1
jax: 0.10.0
libtpu: 0.0.40
codegen_flags: <defaults>
</compile_context>

<pallas_src>
import functools

import jax
import jax.numpy as jnp
import numpy as np
from jax.experimental import pallas as pl
from jax.experimental.pallas import tpu as pltpu


def _dropout_wrapper_kernel(x_ref, w_ref, b_ref, row_ref, col_ref, o_ref, *, p):
    """Single-shot tile: y = dropout(x @ W + b).  grid = (M//tm, N//tn)."""
    # base_model: Linear.  bf16 MXU inputs, f32 accumulate.
    y = jnp.dot(x_ref[...], w_ref[...], preferred_element_type=jnp.float32)
    y = y + b_ref[...].astype(jnp.float32)

    if p > 0.0:  # static trace-time branch (training mode only)
        # Counter-based per-element hash (murmur3 fmix32 avalanche) of the
        # global element index (+ seed, folded into row_ref by the wrapper).
        # Grid-invariant: the mask does not depend on the tiling.
        h = row_ref[...] + col_ref[...]          # (tm,1)+(1,tn) -> (tm,tn) u32
        h = h ^ (h >> 16)
        h = h * jnp.uint32(0x85EBCA6B)
        h = h ^ (h >> 13)
        h = h * jnp.uint32(0xC2B2AE35)
        h = h ^ (h >> 16)
        # keep an element iff its uniform u32 draw >= p * 2^32 (clamped)
        thresh = jnp.uint32(min(int(round(p * float(2 ** 32))), 2 ** 32 - 1))
        keep = h >= thresh
        scale = jnp.float32(1.0 / (1.0 - p))
        y = jnp.where(keep, y * scale, jnp.float32(0.0))

    o_ref[...] = y.astype(o_ref.dtype)


def _round_up(x, m):
    return ((x + m - 1) // m) * m


def _pick_tile(dim, align, target):
    """Largest multiple of `align` that divides `dim` and is <= max(target, align).

    `dim` must already be a multiple of `align` (wrapper pads first).
    """
    t = min(max(target, align), dim)
    t -= t % align
    while dim % t:
        t -= align
    return t


def dropout_wrapper_forward(x, w, b, seed, *, p=0.3, training=True):
    """Forward pass of DropoutWrapper: dropout(base_model(x)).

    x:    (B, D)  float32
    w:    (D, H)  float32   (synthesized Linear weight, in_dim x out_dim)
    b:    (H,)    float32
    seed: int               dropout RNG seed
    """
    if not (0.0 <= p < 1.0):
        raise ValueError(f"dropout p must be in [0, 1), got {p}")

    B, D = x.shape
    D2, H = w.shape
    assert D == D2, "weight/input inner-dim mismatch"

    p_eff = float(p) if training else 0.0  # eval-mode dropout is identity

    # Pad rows to a sublane multiple (8) and output cols to a lane multiple
    # (128): aligned blocks on every generation, lane-dense unmasked stores.
    Bp = _round_up(B, 8)
    Hp = _round_up(H, 128)

    x_bf = x.astype(jnp.bfloat16)
    w_bf = w.astype(jnp.bfloat16)
    b_f = b.astype(jnp.float32)
    if Bp != B:
        x_bf = jnp.pad(x_bf, ((0, Bp - B), (0, 0)))
    if Hp != H:
        w_bf = jnp.pad(w_bf, ((0, 0), (0, Hp - H)))
        b_f = jnp.pad(b_f, ((0, Hp - H),))
    b2 = b_f.reshape(1, Hp)

    # Per-element counter inputs for the dropout hash (replaces program_id).
    # seed is folded in here, so changing the seed does not retrace the kernel.
    gold = jnp.uint32(0x9E3779B9)
    seed_u = jnp.uint32(seed)
    row_base = (jnp.arange(Bp, dtype=jnp.uint32) * jnp.uint32(Hp)
                + seed_u * gold).reshape(Bp, 1)
    col_ids = jnp.arange(Hp, dtype=jnp.uint32).reshape(1, Hp)

    # Tile selection: MXU-friendly output tiles, full-K blocks (no reduction
    # grid axis, no accumulator scratch).
    tm = _pick_tile(Bp, 8, 256)
    tn = _pick_tile(Hp, 128, 512)
    # v7x has 2 TensorCores sharing the "parallel" grid axes: make sure there
    # are >= 2 blocks along M or N when the problem is large enough to split.
    if (Bp // tm) * (Hp // tn) == 1:
        if tm % 16 == 0:
            tm //= 2
        elif tn % 256 == 0:
            tn //= 2
    grid = (Bp // tm, Hp // tn)

    # Explicit VMEM budget (lifts v5e's 16 MiB default scoped limit; stays
    # within v7x's 64 MiB physical VMEM).
    block_bytes = (tm * D * 2 + D * tn * 2 + tn * 4      # x, W, bias blocks
                   + tm * 4 + tn * 4                     # row/col u32 blocks
                   + tm * tn * 4)                        # f32 output block
    vmem_need = 2 * block_bytes                          # double buffering
    vmem_limit = int(min(max(2 * vmem_need, 32 * 1024 * 1024),
                         64 * 1024 * 1024))

    kernel = functools.partial(_dropout_wrapper_kernel, p=p_eff)

    out_pad = pl.pallas_call(
        kernel,
        out_shape=jax.ShapeDtypeStruct((Bp, Hp), jnp.float32),
        grid=grid,
        in_specs=[
            pl.BlockSpec((tm, D), lambda i, j: (i, 0)),   # x row panel
            pl.BlockSpec((D, tn), lambda i, j: (0, j)),   # W col panel
            pl.BlockSpec((1, tn), lambda i, j: (0, j)),   # bias
            pl.BlockSpec((tm, 1), lambda i, j: (i, 0)),   # row hash base
            pl.BlockSpec((1, tn), lambda i, j: (0, j)),   # col ids
        ],
        out_specs=pl.BlockSpec((tm, tn), lambda i, j: (i, j)),
        compiler_params=pltpu.CompilerParams(
            dimension_semantics=("parallel", "parallel"),
            vmem_limit_bytes=vmem_limit),
        cost_estimate=pl.CostEstimate(
            flops=2 * Bp * D * Hp,
            transcendentals=0,
            bytes_accessed=(Bp * D + D * Hp) * 2 + Hp * 4 + Bp * Hp * 4),
    )(x_bf, w_bf, b2, row_base, col_ids)

    return out_pad[:B, :H]


if __name__ == "__main__":
    # Small deterministic setup: batch=8, in-dim=32, hidden=32, dropout p=0.3
    key = jax.random.PRNGKey(0)
    kx, kw, kb = jax.random.split(key, 3)

    B, D, H = 8, 32, 32
    x = jax.random.normal(kx, (B, D), dtype=jnp.float32)
    # deterministic "base_model" Linear params (synthetic, not a checkpoint)
    w = jax.random.normal(kw, (D, H), dtype=jnp.float32) * (1.0 / jnp.sqrt(D))
    b = jax.random.normal(kb, (H,), dtype=jnp.float32) * 0.01

    p = 0.3
    out = dropout_wrapper_forward(x, w, b, seed=1234, p=p, training=True)
    out = jax.block_until_ready(out)
    assert out.shape == (B, H) and out.dtype == jnp.float32

    # reference base_model output with matching bf16 matmul precision
    ref = jnp.dot(x.astype(jnp.bfloat16), w.astype(jnp.bfloat16),
                  preferred_element_type=jnp.float32) + b
    out_np = np.asarray(out)
    ref_np = np.asarray(ref)

    dropped = out_np == 0.0
    frac = float(dropped.mean())
    assert 0.05 < frac < 0.65, f"unexpected drop fraction {frac}"
    kept = ~dropped
    np.testing.assert_allclose(out_np[kept], ref_np[kept] / (1.0 - p),
                               rtol=2e-3, atol=2e-3)

    # eval mode: dropout is identity, RNG-free kernel variant
    out_eval = jax.block_until_ready(
        dropout_wrapper_forward(x, w, b, seed=0, p=p, training=False))
    np.testing.assert_allclose(np.asarray(out_eval), ref_np,
                               rtol=2e-3, atol=2e-3)

    print("KERNEL_OK")
</pallas_src>

<mosaic_0001>
module attributes {stable_mosaic.version = 11 : i64} {
  func.func @_dropout_wrapper_kernel(%arg0: i32, %arg1: i32, %arg2: memref<8x32xbf16, #tpu.memory_space<vmem>>, %arg3: memref<32x128xbf16, #tpu.memory_space<vmem>>, %arg4: memref<1x128xf32, #tpu.memory_space<vmem>>, %arg5: memref<8x1xi32, #tpu.memory_space<vmem>>, %arg6: memref<1x128xi32, #tpu.memory_space<vmem>>, %arg7: memref<8x128xf32, #tpu.memory_space<vmem>>) attributes {dimension_semantics = [#tpu.dimension_semantics<parallel>, #tpu.dimension_semantics<parallel>], iteration_bounds = array<i64: 1, 1>, scalar_prefetch = 0 : i64, scratch_operands = 0 : i64, tpu.core_type = #tpu.core_type<tc>, window_params = [{transform_indices = @transform_0, window_bounds = array<i64: 8, 32>}, {transform_indices = @transform_1, window_bounds = array<i64: 32, 128>}, {transform_indices = @transform_2, window_bounds = array<i64: 1, 128>}, {transform_indices = @transform_3, window_bounds = array<i64: 8, 1>}, {transform_indices = @transform_4, window_bounds = array<i64: 1, 128>}, {transform_indices = @transform_5, window_bounds = array<i64: 8, 128>}]} {
    %c0 = arith.constant 0 : index
    %c0_0 = arith.constant 0 : index
    %0 = vector.load %arg2[%c0, %c0_0] : memref<8x32xbf16, #tpu.memory_space<vmem>>, vector<8x32xbf16>
    %c0_1 = arith.constant 0 : index
    %c0_2 = arith.constant 0 : index
    %1 = vector.load %arg3[%c0_1, %c0_2] : memref<32x128xbf16, #tpu.memory_space<vmem>>, vector<32x128xbf16>
    %cst = arith.constant dense<0.000000e+00> : vector<8x128xf32>
    %2 = tpu.matmul %0, %1, %cst {dimension_numbers = #tpu.dot_dimension_numbers<[1], [0], [0], [1], [0, 0, 1, 1], [], []>} : vector<8x32xbf16>, vector<32x128xbf16>, vector<8x128xf32> -> vector<8x128xf32>
    %c0_3 = arith.constant 0 : index
    %c0_4 = arith.constant 0 : index
    %3 = vector.load %arg4[%c0_3, %c0_4] : memref<1x128xf32, #tpu.memory_space<vmem>>, vector<1x128xf32>
    %4 = vector.broadcast %3 : vector<1x128xf32> to vector<8x128xf32>
    %5 = arith.addf %2, %4 : vector<8x128xf32>
    %c0_5 = arith.constant 0 : index
    %c0_6 = arith.constant 0 : index
    %6 = vector.load %arg5[%c0_5, %c0_6] : memref<8x1xi32, #tpu.memory_space<vmem>>, vector<8x1xi32>
    %c0_7 = arith.constant 0 : index
    %c0_8 = arith.constant 0 : index
    %7 = vector.load %arg6[%c0_7, %c0_8] : memref<1x128xi32, #tpu.memory_space<vmem>>, vector<1x128xi32>
    %8 = vector.broadcast %6 : vector<8x1xi32> to vector<8x128xi32>
    %9 = vector.broadcast %7 : vector<1x128xi32> to vector<8x128xi32>
    %10 = arith.addi %8, %9 : vector<8x128xi32>
    %c16_i32 = arith.constant 16 : i32
    %11 = vector.broadcast %c16_i32 : i32 to vector<8x128xi32>
    %12 = arith.shrui %10, %11 : vector<8x128xi32>
    %13 = arith.xori %10, %12 : vector<8x128xi32>
    %c-2048144789_i32 = arith.constant -2048144789 : i32
    %14 = vector.broadcast %c-2048144789_i32 : i32 to vector<8x128xi32>
    %15 = arith.muli %13, %14 : vector<8x128xi32>
    %c13_i32 = arith.constant 13 : i32
    %16 = vector.broadcast %c13_i32 : i32 to vector<8x128xi32>
    %17 = arith.shrui %15, %16 : vector<8x128xi32>
    %18 = arith.xori %15, %17 : vector<8x128xi32>
    %c-1028477387_i32 = arith.constant -1028477387 : i32
    %19 = vector.broadcast %c-1028477387_i32 : i32 to vector<8x128xi32>
    %20 = arith.muli %18, %19 : vector<8x128xi32>
    %c16_i32_9 = arith.constant 16 : i32
    %21 = vector.broadcast %c16_i32_9 : i32 to vector<8x128xi32>
    %22 = arith.shrui %20, %21 : vector<8x128xi32>
    %23 = arith.xori %20, %22 : vector<8x128xi32>
    %c1288490189_i32 = arith.constant 1288490189 : i32
    %24 = vector.broadcast %c1288490189_i32 : i32 to vector<8x128xi32>
    %25 = arith.cmpi uge, %23, %24 : vector<8x128xi32>
    %cst_10 = arith.constant 1.42857146 : f32
    %26 = vector.broadcast %cst_10 : f32 to vector<8x128xf32>
    %27 = arith.mulf %5, %26 : vector<8x128xf32>
    %cst_11 = arith.constant 0.000000e+00 : f32
    %28 = vector.broadcast %cst_11 : f32 to vector<8x128xf32>
    %29 = arith.select %25, %27, %28 : vector<8x128xi1>, vector<8x128xf32>
    %c0_12 = arith.constant 0 : index
    %c0_13 = arith.constant 0 : index
    %30 = vector.load %arg7[%c0_12, %c0_13] : memref<8x128xf32, #tpu.memory_space<vmem>>, vector<8x128xf32>
    tpu.vector_store %arg7[%c0_12, %c0_13], %29 {strides = array<i32>} : memref<8x128xf32, #tpu.memory_space<vmem>>, vector<8x128xf32>,
    return
  }
  func.func @transform_0(%arg0: i32, %arg1: i32) -> (i32, i32) {
    %c0_i32 = arith.constant 0 : i32
    %c0_i32_0 = arith.constant 0 : i32
    return %arg0, %c0_i32 : i32, i32
  }
  func.func @transform_1(%arg0: i32, %arg1: i32) -> (i32, i32) {
    %c0_i32 = arith.constant 0 : i32
    %c0_i32_0 = arith.constant 0 : i32
    return %c0_i32, %arg1 : i32, i32
  }
  func.func @transform_2(%arg0: i32, %arg1: i32) -> (i32, i32) {
    %c0_i32 = arith.constant 0 : i32
    %c0_i32_0 = arith.constant 0 : i32
    return %c0_i32, %arg1 : i32, i32
  }
  func.func @transform_3(%arg0: i32, %arg1: i32) -> (i32, i32) {
    %c0_i32 = arith.constant 0 : i32
    %c0_i32_0 = arith.constant 0 : i32
    return %arg0, %c0_i32 : i32, i32
  }
  func.func @transform_4(%arg0: i32, %arg1: i32) -> (i32, i32) {
    %c0_i32 = arith.constant 0 : i32
    %c0_i32_0 = arith.constant 0 : i32
    return %c0_i32, %arg1 : i32, i32
  }
  func.func @transform_5(%arg0: i32, %arg1: i32) -> (i32, i32) {
    %c0_i32 = arith.constant 0 : i32
    return %arg0, %arg1 : i32, i32
  }
}

</mosaic_0001>

<bundles_post_ra>
// kernel: tpu_custom_call.1
= control target key start
LH: loop header
LB: loop body
LE: loop exit
PB: predicated region body
PF: predicated region fallthrough
CT: control target
= control target key end

     0   :  { %10 = vsyncpa [#allocation3], 0  ;;  %s288_s0 = inlined_call_operand.vmem [shape: bf16[8,32], index: 0, kind: input, shape index: {}]   ;;  %s289_s1 = inlined_call_operand.hbm [shape: bf16[32,128], index: 1, kind: input, shape index: {}]   ;;  %s290_s2 = inlined_call_operand.vmem [shape: f32[1,128], index: 2, kind: input, shape index: {}]   ;;  %s291_s3 = inlined_call_operand.vmem [shape: u32[8,1], index: 3, kind: input, shape index: {}]   ;;  %s292_s4 = inlined_call_operand.vmem [shape: u32[1,128], index: 4, kind: input, shape index: {}]   ;;  %s293_s5 = inlined_call_operand.hbm [shape: f32[8,128], index: 5, kind: output, shape index: {}]  }
   0x1   :  { %11 = vsyncpa [#allocation4], 0  ;;  %s215_s18 = smov [#allocation2]   ;;  %s167_s22 = scalar_lea.hbm %s289_s1, 256 }
   0x2   :  { %s19_s19 = sshll.u32 %s215_s18, 4  ;;  %p168_p0 = scmp.ne.s32.totalorder %s289_s1, %s167_s22  ;;  %s20_s19 = int_to_ptr.vmem [resolvable:$true] %s19_s19 }
   0x3   :  { %p171_p1 = scmp.lt.u32.totalorder %s167_s22, %s289_s1 }
   0x5   :  { %p173_p2 = pnand %p171_p1, %p168_p0 }
   0x7   :  { %176 = shalt.err (!%p173_p2)
}
   0x8   :  { %s177_s27 = scalar_lea.vmem %s20_s19, 256  ;;  %p182_p4 = scmp.lt.s32.totalorder %s20_s19, %s20_s19 }
   0x9   :  { %p178_p3 = scmp.ne.s32.totalorder %s20_s19, %s177_s27  ;;  %p183_p5 = scmp.lt.s32.totalorder %s177_s27, %s177_s27 }
   0xb   :  { %p184_p6 = por %p183_p5, %p182_p4 }
   0xd   :  { %p185_p7 = pnand %p184_p6, %p178_p3 }
   0xf   :  { %188 = shalt.err (!%p185_p7)
}
  0x10   :  { %s216_s28 = smov 64   ;;  %s217_s29 = smov 4  }
  0x11   :  { %25 = dma.hbm_to_vmem [thread:$0]  %s289_s1, 256, %s20_s19, [#allocation3], %s216_s28, %s216_s28, %s217_s29  }
  0x12   :  { %211 = dma.done.wait [#allocation3], 256  }
  0x13   :  { %212 = vsyncadd [#allocation3], 4294967040  ;;  %v218_v0 = vmov 0.0   ;;  %vm219_vm0 = vmmov 0   ;;  %v220_v1 = vmov 0   ;;  %v165_v2 = vld [vmem:[#allocation2] sm:$0xff]  }
  0x14   :  { %149 = vmatprep.subr.bf16.mxu0 %v218_v0  ;;  %153 = vmatprep.mubr.msk.bf16.mxu0 %vm219_vm0, %v218_v0  ;;  %v166_v3 = vld [vmem:[#allocation2 + $0x8] sm:$0xff]   ;;  %v104_v4 = vld [vmem:[%s291_s3] sm:$0xff]  ;;  %vm60_vm1 = vcmask 261120  }
  0x15   :  { %164 = vset.pattern.permute.xlu0 %v220_v1  ;;  %150 = vmatpush3.bf16.msra.mxu0 %v165_v2  ;;  %v36_v5 = vld [vmem:[%s288_s0] sm:$0xf]  ;;  %s221_s0 = smov [#allocation5]  }
  0x16   :  { %151 = vmatprep.subr.bf16.mxu0 %v218_v0  ;;  %107 = vperm.xlu0 %164, %v104_v4   ;;  %v145_v6 = vld [vmem:[%s292_s4] ss:$0 sm:$0xff]  ;;  %s132_s13 = sshll.u32 %s221_s0, 4  ;;  %s133_s13 = int_to_ptr.vmem [resolvable:$true] %s132_s13 }
  0x17   :  { %v141_v16 = vld [vmem:[%s290_s2] ss:$0 sm:$0xff]  ;;  %s189_s4 = scalar_lea.vmem %s133_s13, 128  ;;  %p194_p9 = scmp.lt.s32.totalorder %s133_s13, %s133_s13 }
  0x18   :  { %p190_p8 = scmp.ne.s32.totalorder %s133_s13, %s189_s4  ;;  %p195_p10 = scmp.lt.s32.totalorder %s189_s4, %s189_s4 }
  0x19   :  { %152 = vmatpush3.bf16.msra.mxu0 %v166_v3 }
  0x1a   :  { %p196_p11 = por %p195_p10, %p194_p9 }
  0x1c   :  { %154 = vmatmul.mubr.msk.bf16.vlgmr.msra.gmra.mrb[0].mxu0 %vm60_vm1, %v36_v5  ;;  %p197_p12 = pnand %p196_p11, %p190_p8 }
  0x95   :  { %v108_v7 = vpop.permute.xlu0 %107 }
  0x96   :  { %v113_v8 = vadd.s32 %v145_v6, %v108_v7 }
  0x98   :  { %v114_v9 = vshrl.u32 %v113_v8, 16 }
  0x9a   :  { %v115_v10 = vxor.u32 %v114_v9, %v113_v8 }
  0x9c   :  { %v116_v11 = vmul.u32 2246822507, %v115_v10 }
  0x9e   :  { %v117_v12 = vshrl.u32 %v116_v11, 13 }
  0xa0   :  { %v118_v13 = vxor.u32 %v117_v12, %v116_v11 }
  0xa2   :  { %v119_v14 = vmul.u32 3266489909, %v118_v13 }
  0xa4   :  { %v120_v15 = vshrl.u32 %v119_v14, 16 }
  0xa6   :  { %v121_v18 = vxor.u32 %v120_v15, %v119_v14 }
  0xa8   :  { %vm122_vm2 = vcmp.ge.u32.totalorder %v121_v18, 1288490189 }
  0xef   :  { %v98_v17 = vpop.f32.mrb[0].mxu0 }
  0xf0   :  { %v99_v19 = vadd.f32 %v141_v16, %v98_v17  ;;  %v155_v20 = vpop.f32.mrb[1].mxu0 }
  0xf1   :  { %v101_v21 = vpop.f32.mrb[2].mxu0 }
  0xf2   :  { %v123_v22 = vmul.f32 1.4285715, %v99_v19  ;;  %v156_v23 = vpop.f32.mrb[3].mxu0 }
  0xf4   :  { %v124_v24 = vsel %vm122_vm2, %v123_v22, 0.0 }
  0xf5   :  { %125 = vst [vmem:[#allocation5] sm:$0xff] %v124_v24 }
  0xf6   :  { %200 = shalt.err (!%p197_p12)
}
  0xf7   :  { %s201_s15 = scalar_lea.hbm %s293_s5, 128 }
  0xf8   :  { %p202_p13 = scmp.ne.s32.totalorder %s293_s5, %s201_s15  ;;  %p205_p0 = scmp.lt.u32.totalorder %s201_s15, %s293_s5 }
  0xfa   :  { %p207_p1 = pnand %p205_p0, %p202_p13 }
  0xfc   :  { %210 = shalt.err (!%p207_p1)
}
  0xfd   :  { %135 = dma.vmem_to_hbm [thread:$0]  %s133_s13, 128, %s293_s5, [#allocation4]  }
  0xfe   :  { %213 = dma.done.wait [#allocation4], 128  }
  0xff   :  { %214 = vsyncadd [#allocation4], 4294967168 }
 0x100   :  { %139 = vsyncpa [#allocation3], 1 }
 0x101   :  { %140 = vsyncpa [#allocation4], 1 }

</bundles_post_ra>
